<compile_context>
chip_gen: v7x
topology: tpu7x:2x2x1
jax: 0.10.0
libtpu: 0.0.40
codegen_flags: <defaults>
</compile_context>

<pallas_src>
import functools

import jax
import jax.numpy as jnp
from jax.experimental import pallas as pl
from jax.experimental.pallas import tpu as pltpu


def _round_up(x, m):
    return ((x + m - 1) // m) * m


def critic_kernel(obs_ref, act_ref, w1o_ref, w1a_ref, b1_ref, w2_ref, b2_ref,
                  w3_ref, b3_ref, out_ref):
    # preprocess_net layer 1: fused concat -> Linear -> ReLU (bf16 MXU, f32 acc)
    h1 = jnp.dot(obs_ref[...], w1o_ref[...], preferred_element_type=jnp.float32)
    h1 = h1 + jnp.dot(act_ref[...], w1a_ref[...],
                      preferred_element_type=jnp.float32)
    h1 = jnp.maximum(h1 + b1_ref[...], 0.0)

    # preprocess_net layer 2: Linear -> ReLU (bf16 MXU, f32 acc)
    h2 = jnp.dot(h1.astype(jnp.bfloat16), w2_ref[...],
                 preferred_element_type=jnp.float32)
    h2 = jnp.maximum(h2 + b2_ref[...], 0.0)

    # Critic.last: Linear(H, 1) as VPU multiply + lane reduce (avoids an N=1
    # MXU pass); w3 is passed as a (1, H) row, b3 as a (1, 1) scalar.
    q = jnp.sum(h2 * w3_ref[...], axis=-1, keepdims=True) + b3_ref[...]
    out_ref[...] = q.astype(out_ref.dtype)


@functools.partial(jax.jit, static_argnames=("tile_b",))
def critic_forward(obs, act, params, *, tile_b=1024):
    """obs: (B, obs_dim), act: (B, act_dim) -> Q: (B, 1) float32."""
    B = obs.shape[0]
    obs = obs.reshape(B, -1)
    act = act.reshape(B, -1)
    obs_dim = obs.shape[1]
    act_dim = act.shape[1]
    H = params["w2"].shape[0]

    # Batch tiling: tile is a multiple of 8 sublanes; pad B up to a whole
    # number of tiles and slice the result back.
    tb = min(tile_b, _round_up(B, 8))
    padded_B = _round_up(B, tb)
    n_tiles = padded_B // tb

    # bf16 activations / matmul weights (f32 accumulation in-kernel).
    obs_b = obs.astype(jnp.bfloat16)
    act_b = act.astype(jnp.bfloat16)
    if padded_B != B:
        obs_b = jnp.pad(obs_b, ((0, padded_B - B), (0, 0)))
        act_b = jnp.pad(act_b, ((0, padded_B - B), (0, 0)))

    w1 = params["w1"]
    w1o = w1[:obs_dim].astype(jnp.bfloat16)                   # (obs_dim, H)
    w1a = w1[obs_dim:].astype(jnp.bfloat16)                   # (act_dim, H)
    b1 = params["b1"].reshape(1, H).astype(jnp.float32)       # (1, H)
    w2 = params["w2"].astype(jnp.bfloat16)                    # (H, H)
    b2 = params["b2"].reshape(1, H).astype(jnp.float32)       # (1, H)
    w3_row = params["w3"].reshape(1, H).astype(jnp.float32)   # (1, H)
    b3 = params["b3"].reshape(1, 1).astype(jnp.float32)       # (1, 1)

    tile_spec = lambda i: (i, 0)
    const_spec = lambda i: (0, 0)

    q = pl.pallas_call(
        critic_kernel,
        out_shape=jax.ShapeDtypeStruct((padded_B, 1), jnp.float32),
        grid=(n_tiles,),
        in_specs=[
            pl.BlockSpec((tb, obs_dim), tile_spec),    # obs tiles (pipelined)
            pl.BlockSpec((tb, act_dim), tile_spec),    # act tiles (pipelined)
            pl.BlockSpec((obs_dim, H), const_spec),    # w1_obs  (resident)
            pl.BlockSpec((act_dim, H), const_spec),    # w1_act  (resident)
            pl.BlockSpec((1, H), const_spec),          # b1
            pl.BlockSpec((H, H), const_spec),          # w2
            pl.BlockSpec((1, H), const_spec),          # b2
            pl.BlockSpec((1, H), const_spec),          # w3 row
            pl.BlockSpec((1, 1), const_spec),          # b3
        ],
        out_specs=pl.BlockSpec((tb, 1), tile_spec),
        compiler_params=pltpu.CompilerParams(
            dimension_semantics=("parallel",),
            vmem_limit_bytes=64 << 20),
    )(obs_b, act_b, w1o, w1a, b1, w2, b2, w3_row, b3)

    return q[:B]


def init_params(key, in_dim, hidden):
    """Deterministic synthetic parameters (shapes match the PyTorch module)."""
    ks = jax.random.split(key, 6)
    scale = 0.1
    return {
        # preprocess_net (Net) MLP: in_dim -> hidden -> hidden
        "w1": scale * jax.random.normal(ks[0], (in_dim, hidden), jnp.float32),
        "b1": scale * jax.random.normal(ks[1], (1, hidden), jnp.float32),
        "w2": scale * jax.random.normal(ks[2], (hidden, hidden), jnp.float32),
        "b2": scale * jax.random.normal(ks[3], (1, hidden), jnp.float32),
        # Critic.last: hidden -> 1
        "w3": scale * jax.random.normal(ks[4], (hidden, 1), jnp.float32),
        "b3": scale * jax.random.normal(ks[5], (1, 1), jnp.float32),
    }


if __name__ == "__main__":
    key = jax.random.PRNGKey(0)
    k_obs, k_act, k_par = jax.random.split(key, 3)

    B, obs_dim, act_dim, hidden = 8, 16, 8, 32
    obs = jax.random.normal(k_obs, (B, obs_dim), jnp.float32)
    act = jax.random.normal(k_act, (B, act_dim), jnp.float32)
    params = init_params(k_par, obs_dim + act_dim, hidden)

    q = critic_forward(obs, act, params)
    q = jax.block_until_ready(q)
    assert q.shape == (B, 1)

    # Reference 1: emulate the kernel's bf16-matmul / f32-accumulate pipeline.
    ob, ab = obs.astype(jnp.bfloat16), act.astype(jnp.bfloat16)
    x_b = jnp.concatenate([ob, ab], axis=-1)
    h1 = jnp.maximum(
        jnp.dot(x_b, params["w1"].astype(jnp.bfloat16),
                preferred_element_type=jnp.float32) + params["b1"], 0.0)
    h2 = jnp.maximum(
        jnp.dot(h1.astype(jnp.bfloat16), params["w2"].astype(jnp.bfloat16),
                preferred_element_type=jnp.float32) + params["b2"], 0.0)
    q_ref_bf16 = h2 @ params["w3"] + params["b3"]
    assert jnp.allclose(q, q_ref_bf16, atol=1e-3, rtol=1e-3)

    # Reference 2: pure-f32 PyTorch-equivalent math (loose tolerance: bf16 matmuls).
    x = jnp.concatenate([obs, act], axis=-1)
    h1f = jnp.maximum(x @ params["w1"] + params["b1"], 0.0)
    h2f = jnp.maximum(h1f @ params["w2"] + params["b2"], 0.0)
    q_ref_f32 = h2f @ params["w3"] + params["b3"]
    assert jnp.allclose(q, q_ref_f32, atol=5e-2, rtol=5e-2)

    print("KERNEL_OK")
</pallas_src>

<mosaic_0001>
module attributes {stable_mosaic.version = 11 : i64} {
  func.func @critic_kernel(%arg0: i32, %arg1: memref<8x16xbf16, #tpu.memory_space<vmem>>, %arg2: memref<8x8xbf16, #tpu.memory_space<vmem>>, %arg3: memref<16x32xbf16, #tpu.memory_space<vmem>>, %arg4: memref<8x32xbf16, #tpu.memory_space<vmem>>, %arg5: memref<1x32xf32, #tpu.memory_space<vmem>>, %arg6: memref<32x32xbf16, #tpu.memory_space<vmem>>, %arg7: memref<1x32xf32, #tpu.memory_space<vmem>>, %arg8: memref<1x32xf32, #tpu.memory_space<vmem>>, %arg9: memref<1x1xf32, #tpu.memory_space<vmem>>, %arg10: memref<8x1xf32, #tpu.memory_space<vmem>>) attributes {dimension_semantics = [#tpu.dimension_semantics<parallel>], iteration_bounds = array<i64: 1>, scalar_prefetch = 0 : i64, scratch_operands = 0 : i64, tpu.core_type = #tpu.core_type<tc>, window_params = [{transform_indices = @transform_0, window_bounds = array<i64: 8, 16>}, {transform_indices = @transform_1, window_bounds = array<i64: 8, 8>}, {pipeline_mode = #tpu.pipeline_mode<synchronous>, transform_indices = @transform_2, window_bounds = array<i64: 16, 32>}, {pipeline_mode = #tpu.pipeline_mode<synchronous>, transform_indices = @transform_3, window_bounds = array<i64: 8, 32>}, {pipeline_mode = #tpu.pipeline_mode<synchronous>, transform_indices = @transform_4, window_bounds = array<i64: 1, 32>}, {pipeline_mode = #tpu.pipeline_mode<synchronous>, transform_indices = @transform_5, window_bounds = array<i64: 32, 32>}, {pipeline_mode = #tpu.pipeline_mode<synchronous>, transform_indices = @transform_6, window_bounds = array<i64: 1, 32>}, {pipeline_mode = #tpu.pipeline_mode<synchronous>, transform_indices = @transform_7, window_bounds = array<i64: 1, 32>}, {pipeline_mode = #tpu.pipeline_mode<synchronous>, transform_indices = @transform_8, window_bounds = array<i64: 1, 1>}, {transform_indices = @transform_9, window_bounds = array<i64: 8, 1>}]} {
    %c0 = arith.constant 0 : index
    %c0_0 = arith.constant 0 : index
    %0 = vector.load %arg1[%c0, %c0_0] : memref<8x16xbf16, #tpu.memory_space<vmem>>, vector<8x16xbf16>
    %c0_1 = arith.constant 0 : index
    %c0_2 = arith.constant 0 : index
    %1 = vector.load %arg3[%c0_1, %c0_2] : memref<16x32xbf16, #tpu.memory_space<vmem>>, vector<16x32xbf16>
    %cst = arith.constant dense<0.000000e+00> : vector<8x32xf32>
    %2 = tpu.matmul %0, %1, %cst {dimension_numbers = #tpu.dot_dimension_numbers<[1], [0], [0], [1], [0, 0, 1, 1], [], []>} : vector<8x16xbf16>, vector<16x32xbf16>, vector<8x32xf32> -> vector<8x32xf32>
    %c0_3 = arith.constant 0 : index
    %c0_4 = arith.constant 0 : index
    %3 = vector.load %arg2[%c0_3, %c0_4] : memref<8x8xbf16, #tpu.memory_space<vmem>>, vector<8x8xbf16>
    %c0_5 = arith.constant 0 : index
    %c0_6 = arith.constant 0 : index
    %4 = vector.load %arg4[%c0_5, %c0_6] : memref<8x32xbf16, #tpu.memory_space<vmem>>, vector<8x32xbf16>
    %cst_7 = arith.constant dense<0.000000e+00> : vector<8x32xf32>
    %5 = tpu.matmul %3, %4, %cst_7 {dimension_numbers = #tpu.dot_dimension_numbers<[1], [0], [0], [1], [0, 0, 1, 1], [], []>} : vector<8x8xbf16>, vector<8x32xbf16>, vector<8x32xf32> -> vector<8x32xf32>
    %6 = arith.addf %2, %5 : vector<8x32xf32>
    %c0_8 = arith.constant 0 : index
    %c0_9 = arith.constant 0 : index
    %7 = vector.load %arg5[%c0_8, %c0_9] : memref<1x32xf32, #tpu.memory_space<vmem>>, vector<1x32xf32>
    %8 = vector.broadcast %7 : vector<1x32xf32> to vector<8x32xf32>
    %9 = arith.addf %6, %8 : vector<8x32xf32>
    %cst_10 = arith.constant 0.000000e+00 : f32
    %10 = vector.broadcast %cst_10 : f32 to vector<8x32xf32>
    %11 = arith.maximumf %9, %10 : vector<8x32xf32>
    %12 = arith.truncf %11 : vector<8x32xf32> to vector<8x32xbf16>
    %c0_11 = arith.constant 0 : index
    %c0_12 = arith.constant 0 : index
    %13 = vector.load %arg6[%c0_11, %c0_12] : memref<32x32xbf16, #tpu.memory_space<vmem>>, vector<32x32xbf16>
    %cst_13 = arith.constant dense<0.000000e+00> : vector<8x32xf32>
    %14 = tpu.matmul %12, %13, %cst_13 {dimension_numbers = #tpu.dot_dimension_numbers<[1], [0], [0], [1], [0, 0, 1, 1], [], []>} : vector<8x32xbf16>, vector<32x32xbf16>, vector<8x32xf32> -> vector<8x32xf32>
    %c0_14 = arith.constant 0 : index
    %c0_15 = arith.constant 0 : index
    %15 = vector.load %arg7[%c0_14, %c0_15] : memref<1x32xf32, #tpu.memory_space<vmem>>, vector<1x32xf32>
    %16 = vector.broadcast %15 : vector<1x32xf32> to vector<8x32xf32>
    %17 = arith.addf %14, %16 : vector<8x32xf32>
    %cst_16 = arith.constant 0.000000e+00 : f32
    %18 = vector.broadcast %cst_16 : f32 to vector<8x32xf32>
    %19 = arith.maximumf %17, %18 : vector<8x32xf32>
    %c0_17 = arith.constant 0 : index
    %c0_18 = arith.constant 0 : index
    %20 = vector.load %arg8[%c0_17, %c0_18] : memref<1x32xf32, #tpu.memory_space<vmem>>, vector<1x32xf32>
    %21 = vector.broadcast %20 : vector<1x32xf32> to vector<8x32xf32>
    %22 = arith.mulf %19, %21 : vector<8x32xf32>
    %cst_19 = arith.constant dense<0.000000e+00> : vector<8xf32>
    %23 = vector.multi_reduction <add>, %22, %cst_19 [1] : vector<8x32xf32> to vector<8xf32>
    %24 = vector.shape_cast %23 : vector<8xf32> to vector<8x1xf32>
    %c0_20 = arith.constant 0 : index
    %c0_21 = arith.constant 0 : index
    %25 = vector.load %arg9[%c0_20, %c0_21] : memref<1x1xf32, #tpu.memory_space<vmem>>, vector<1x1xf32>
    %26 = vector.broadcast %25 : vector<1x1xf32> to vector<8x1xf32>
    %27 = arith.addf %24, %26 : vector<8x1xf32>
    %c0_22 = arith.constant 0 : index
    %c0_23 = arith.constant 0 : index
    %28 = vector.load %arg10[%c0_22, %c0_23] : memref<8x1xf32, #tpu.memory_space<vmem>>, vector<8x1xf32>
    tpu.vector_store %arg10[%c0_22, %c0_23], %27 {strides = array<i32>} : memref<8x1xf32, #tpu.memory_space<vmem>>, vector<8x1xf32>,
    return
  }
  func.func @transform_0(%arg0: i32) -> (i32, i32) {
    %c0_i32 = arith.constant 0 : i32
    %c0_i32_0 = arith.constant 0 : i32
    return %arg0, %c0_i32 : i32, i32
  }
  func.func @transform_1(%arg0: i32) -> (i32, i32) {
    %c0_i32 = arith.constant 0 : i32
    %c0_i32_0 = arith.constant 0 : i32
    return %arg0, %c0_i32 : i32, i32
  }
  func.func @transform_2(%arg0: i32) -> (i32, i32) {
    %c0_i32 = arith.constant 0 : i32
    %c0_i32_0 = arith.constant 0 : i32
    %c0_i32_1 = arith.constant 0 : i32
    return %c0_i32, %c0_i32_0 : i32, i32
  }
  func.func @transform_3(%arg0: i32) -> (i32, i32) {
    %c0_i32 = arith.constant 0 : i32
    %c0_i32_0 = arith.constant 0 : i32
    %c0_i32_1 = arith.constant 0 : i32
    return %c0_i32, %c0_i32_0 : i32, i32
  }
  func.func @transform_4(%arg0: i32) -> (i32, i32) {
    %c0_i32 = arith.constant 0 : i32
    %c0_i32_0 = arith.constant 0 : i32
    %c0_i32_1 = arith.constant 0 : i32
    return %c0_i32, %c0_i32_0 : i32, i32
  }
  func.func @transform_5(%arg0: i32) -> (i32, i32) {
    %c0_i32 = arith.constant 0 : i32
    %c0_i32_0 = arith.constant 0 : i32
    %c0_i32_1 = arith.constant 0 : i32
    return %c0_i32, %c0_i32_0 : i32, i32
  }
  func.func @transform_6(%arg0: i32) -> (i32, i32) {
    %c0_i32 = arith.constant 0 : i32
    %c0_i32_0 = arith.constant 0 : i32
    %c0_i32_1 = arith.constant 0 : i32
    return %c0_i32, %c0_i32_0 : i32, i32
  }
  func.func @transform_7(%arg0: i32) -> (i32, i32) {
    %c0_i32 = arith.constant 0 : i32
    %c0_i32_0 = arith.constant 0 : i32
    %c0_i32_1 = arith.constant 0 : i32
    return %c0_i32, %c0_i32_0 : i32, i32
  }
  func.func @transform_8(%arg0: i32) -> (i32, i32) {
    %c0_i32 = arith.constant 0 : i32
    %c0_i32_0 = arith.constant 0 : i32
    %c0_i32_1 = arith.constant 0 : i32
    return %c0_i32, %c0_i32_0 : i32, i32
  }
  func.func @transform_9(%arg0: i32) -> (i32, i32) {
    %c0_i32 = arith.constant 0 : i32
    %c0_i32_0 = arith.constant 0 : i32
    return %arg0, %c0_i32 : i32, i32
  }
}

</mosaic_0001>

<bundles_post_ra>
// kernel: critic_forward.1
= control target key start
LH: loop header
LB: loop body
LE: loop exit
PB: predicated region body
PF: predicated region fallthrough
CT: control target
= control target key end

     0   :  { %s800_s0 = inlined_call_operand.hbm [shape: bf16[8,16], index: 0, kind: input, shape index: {}]   ;;  %s801_s1 = inlined_call_operand.hbm [shape: bf16[8,8], index: 1, kind: input, shape index: {}]   ;;  %s802_s2 = inlined_call_operand.hbm [shape: bf16[16,32], index: 2, kind: input, shape index: {}]   ;;  %s803_s3 = inlined_call_operand.hbm [shape: bf16[8,32], index: 3, kind: input, shape index: {}]   ;;  %s804_s4 = inlined_call_operand.hbm [shape: f32[1,32], index: 4, kind: input, shape index: {}]   ;;  %s805_s5 = inlined_call_operand.hbm [shape: bf16[32,32], index: 5, kind: input, shape index: {}]   ;;  %s806_s6 = inlined_call_operand.hbm [shape: f32[1,32], index: 6, kind: input, shape index: {}]   ;;  %s807_s7 = inlined_call_operand.hbm [shape: f32[1,32], index: 7, kind: input, shape index: {}]   ;;  %s808_s8 = inlined_call_operand.<no memory space> [shape: f32[1,1], index: 8, kind: input, shape index: {}]   ;;  %s809_s9 = inlined_call_operand.hbm [shape: f32[8,1], index: 9, kind: output, shape index: {}]  }
   0x1   :  { %v14_v0 = vstv %s808_s8 }
   0x2   :  { %15 = vst [vmem:[#allocation2] sm:$0x1] %v14_v0 }
   0x3   :  { %16 = vsyncpa [#allocation4], 0 }
   0x4   :  { %17 = vsyncpa [#allocation7], 0 }
   0x5   :  { %18 = vsyncpa [#allocation10], 0 }
   0x6   :  { %19 = vsyncpa [#allocation13], 0 }
   0x7   :  { %20 = vsyncpa [#allocation16], 0 }
   0x8   :  { %21 = vsyncpa [#allocation5], 0  ;;  %s617_s11 = smov [#allocation6]   ;;  %s618_s13 = smov [#allocation9]  }
   0x9   :  { %s38_s12 = sshll.u32 %s617_s11, 4  ;;  %s60_s14 = sshll.u32 %s618_s13, 4  ;;  %s39_s12 = int_to_ptr.vmem [resolvable:$true] %s38_s12  ;;  %s61_s14 = int_to_ptr.vmem [resolvable:$true] %s60_s14 }
   0xa   :  { %s407_s17 = scalar_lea.hbm %s801_s1, 64 }
   0xb   :  { %p408_p0 = scmp.ne.s32.totalorder %s801_s1, %s407_s17  ;;  %p411_p1 = scmp.lt.u32.totalorder %s407_s17, %s801_s1 }
   0xd   :  { %p413_p2 = pnand %p411_p1, %p408_p0 }
   0xf   :  { %416 = shalt.err (!%p413_p2)
}
  0x10   :  { %s417_s21 = scalar_lea.vmem %s39_s12, 64  ;;  %p422_p4 = scmp.lt.s32.totalorder %s39_s12, %s39_s12 }
  0x11   :  { %p418_p3 = scmp.ne.s32.totalorder %s39_s12, %s417_s21  ;;  %p423_p5 = scmp.lt.s32.totalorder %s417_s21, %s417_s21 }
  0x13   :  { %p424_p6 = por %p423_p5, %p422_p4 }
  0x15   :  { %p425_p7 = pnand %p424_p6, %p418_p3 }
  0x17   :  { %428 = shalt.err (!%p425_p7)
}
  0x18   :  { %41 = dma.hbm_to_vmem [thread:$0]  %s801_s1, 64, %s39_s12, [#allocation7]  }
  0x19   :  { %s429_s26 = scalar_lea.hbm %s803_s3, 64 }
  0x1a   :  { %p430_p8 = scmp.ne.s32.totalorder %s803_s3, %s429_s26  ;;  %p433_p9 = scmp.lt.u32.totalorder %s429_s26, %s803_s3 }
  0x1c   :  { %p435_p10 = pnand %p433_p9, %p430_p8 }
  0x1e   :  { %438 = shalt.err (!%p435_p10)
}
  0x1f   :  { %s439_s10 = scalar_lea.vmem %s61_s14, 64  ;;  %p444_p12 = scmp.lt.s32.totalorder %s61_s14, %s61_s14 }
  0x20   :  { %p440_p11 = scmp.ne.s32.totalorder %s61_s14, %s439_s10  ;;  %p445_p13 = scmp.lt.s32.totalorder %s439_s10, %s439_s10 }
  0x22   :  { %p446_p0 = por %p445_p13, %p444_p12 }
  0x24   :  { %p447_p1 = pnand %p446_p0, %p440_p11 }
  0x26   :  { %450 = shalt.err (!%p447_p1)
}
  0x27   :  { %63 = dma.hbm_to_vmem [thread:$0]  %s803_s3, 64, %s61_s14, [#allocation10]  }
  0x28   :  { %s619_s12 = smov [#allocation12]   ;;  %s620_s15 = smov [#allocation3]  }
  0x29   :  { %s79_s13 = sshll.u32 %s619_s12, 4  ;;  %s28_s16 = sshll.u32 %s620_s15, 4  ;;  %s80_s13 = int_to_ptr.vmem [resolvable:$true] %s79_s13  ;;  %s29_s16 = int_to_ptr.vmem [resolvable:$true] %s28_s16 }
  0x2a   :  { %s451_s19 = scalar_lea.hbm %s805_s5, 256 }
  0x2b   :  { %p452_p2 = scmp.ne.s32.totalorder %s805_s5, %s451_s19  ;;  %p455_p3 = scmp.lt.u32.totalorder %s451_s19, %s805_s5 }
  0x2d   :  { %p457_p4 = pnand %p455_p3, %p452_p2 }
  0x2f   :  { %460 = shalt.err (!%p457_p4)
}
  0x30   :  { %s461_s3 = scalar_lea.vmem %s80_s13, 256  ;;  %p466_p6 = scmp.lt.s32.totalorder %s80_s13, %s80_s13 }
  0x31   :  { %p462_p5 = scmp.ne.s32.totalorder %s80_s13, %s461_s3  ;;  %p467_p7 = scmp.lt.s32.totalorder %s461_s3, %s461_s3 }
  0x33   :  { %p468_p8 = por %p467_p7, %p466_p6 }
  0x35   :  { %p469_p9 = pnand %p468_p8, %p462_p5 }
  0x37   :  { %472 = shalt.err (!%p469_p9)
}
  0x38   :  { %s621_s14 = smov 64   ;;  %s622_s23 = smov 4  }
  0x39   :  { %85 = dma.hbm_to_vmem [thread:$0]  %s805_s5, 256, %s80_s13, [#allocation13], %s621_s14, %s621_s14, %s622_s23  }
  0x3a   :  { %s473_s28 = scalar_lea.hbm %s800_s0, 64 }
  0x3b   :  { %p474_p10 = scmp.ne.s32.totalorder %s800_s0, %s473_s28  ;;  %p477_p11 = scmp.lt.u32.totalorder %s473_s28, %s800_s0 }
  0x3d   :  { %p479_p12 = pnand %p477_p11, %p474_p10 }
  0x3f   :  { %482 = shalt.err (!%p479_p12)
}
  0x40   :  { %s483_s11 = scalar_lea.vmem %s29_s16, 64  ;;  %p488_p0 = scmp.lt.s32.totalorder %s29_s16, %s29_s16 }
  0x41   :  { %p484_p13 = scmp.ne.s32.totalorder %s29_s16, %s483_s11  ;;  %p489_p1 = scmp.lt.s32.totalorder %s483_s11, %s483_s11 }
  0x43   :  { %p490_p2 = por %p489_p1, %p488_p0 }
  0x45   :  { %p491_p3 = pnand %p490_p2, %p484_p13 }
  0x47   :  { %494 = shalt.err (!%p491_p3)
}
  0x48   :  { %31 = dma.hbm_to_vmem [thread:$0]  %s800_s0, 64, %s29_s16, [#allocation4]  }
  0x49   :  { %s623_s13 = smov [#allocation8]   ;;  %s624_s17 = smov [#allocation11]  }
  0x4a   :  { %s47_s15 = sshll.u32 %s623_s13, 4  ;;  %s70_s18 = sshll.u32 %s624_s17, 4  ;;  %s48_s15 = int_to_ptr.vmem [resolvable:$true] %s47_s15  ;;  %s71_s18 = int_to_ptr.vmem [resolvable:$true] %s70_s18 }
  0x4b   :  { %s495_s20 = scalar_lea.hbm %s802_s2, 128 }
  0x4c   :  { %p496_p4 = scmp.ne.s32.totalorder %s802_s2, %s495_s20  ;;  %p499_p5 = scmp.lt.u32.totalorder %s495_s20, %s802_s2 }
  0x4e   :  { %p501_p6 = pnand %p499_p5, %p496_p4 }
  0x50   :  { %504 = shalt.err (!%p501_p6)
}
  0x51   :  { %s505_s0 = scalar_lea.vmem %s48_s15, 128  ;;  %p510_p8 = scmp.lt.s32.totalorder %s48_s15, %s48_s15 }
  0x52   :  { %p506_p7 = scmp.ne.s32.totalorder %s48_s15, %s505_s0  ;;  %p511_p9 = scmp.lt.s32.totalorder %s505_s0, %s505_s0 }
  0x54   :  { %p512_p10 = por %p511_p9, %p510_p8 }
  0x56   :  { %p513_p11 = pnand %p512_p10, %p506_p7 }
  0x58   :  { %516 = shalt.err (!%p513_p11)
}
  0x59   :  { %53 = dma.hbm_to_vmem [thread:$0]  %s802_s2, 128, %s48_s15, [#allocation7], %s621_s14, %s621_s14, %s622_s23  }
  0x5a   :  { %s517_s28 = scalar_lea.hbm %s804_s4, 16 }
  0x5b   :  { %p518_p12 = scmp.ne.s32.totalorder %s804_s4, %s517_s28  ;;  %p521_p13 = scmp.lt.u32.totalorder %s517_s28, %s804_s4 }
  0x5d   :  { %p523_p0 = pnand %p521_p13, %p518_p12 }
  0x5f   :  { %526 = shalt.err (!%p523_p0)
}
  0x60   :  { %s527_s11 = scalar_lea.vmem %s71_s18, 16  ;;  %s531_s5 = scalar_lea.vmem %s71_s18, 32 }
  0x61   :  { %p528_p1 = scmp.ne.s32.totalorder %s71_s18, %s527_s11  ;;  %p532_p2 = scmp.lt.s32.totalorder %s71_s18, %s71_s18 }
  0x62   :  { %p533_p3 = scmp.lt.s32.totalorder %s531_s5, %s527_s11 }
  0x64   :  { %p534_p4 = por %p533_p3, %p532_p2 }
  0x66   :  { %p535_p5 = pnand %p534_p4, %p528_p1 }
  0x68   :  { %538 = shalt.err (!%p535_p5)
}
  0x69   :  { %73 = dma.hbm_to_vmem [thread:$0]  %s804_s4, 16, %s71_s18, [#allocation10]  }
  0x6a   :  { %s625_s23 = smov [#allocation14]   ;;  %s626_s13 = smov [#allocation15]  }
  0x6b   :  { %s92_s12 = sshll.u32 %s625_s23, 4  ;;  %s102_s15 = sshll.u32 %s626_s13, 4  ;;  %s93_s12 = int_to_ptr.vmem [resolvable:$true] %s92_s12  ;;  %s103_s15 = int_to_ptr.vmem [resolvable:$true] %s102_s15 }
  0x6c   :  { %s539_s8 = scalar_lea.hbm %s806_s6, 16 }
  0x6d   :  { %p540_p6 = scmp.ne.s32.totalorder %s806_s6, %s539_s8  ;;  %p543_p7 = scmp.lt.u32.totalorder %s539_s8, %s806_s6 }
  0x6f   :  { %p545_p8 = pnand %p543_p7, %p540_p6 }
  0x71   :  { %548 = shalt.err (!%p545_p8)
}
  0x72   :  { %s549_s4 = scalar_lea.vmem %s93_s12, 16  ;;  %s553_s18 = scalar_lea.vmem %s93_s12, 32 }
  0x73   :  { %p550_p9 = scmp.ne.s32.totalorder %s93_s12, %s549_s4  ;;  %p554_p10 = scmp.lt.s32.totalorder %s93_s12, %s93_s12 }
  0x74   :  { %p555_p11 = scmp.lt.s32.totalorder %s553_s18, %s549_s4 }
  0x76   :  { %p556_p12 = por %p555_p11, %p554_p10 }
  0x78   :  { %p557_p13 = pnand %p556_p12, %p550_p9 }
  0x7a   :  { %560 = shalt.err (!%p557_p13)
}
  0x7b   :  { %95 = dma.hbm_to_vmem [thread:$0]  %s806_s6, 16, %s93_s12, [#allocation13]  }
  0x7c   :  { %s561_s26 = scalar_lea.hbm %s807_s7, 16 }
  0x7d   :  { %p562_p0 = scmp.ne.s32.totalorder %s807_s7, %s561_s26  ;;  %p565_p1 = scmp.lt.u32.totalorder %s561_s26, %s807_s7 }
  0x7f   :  { %p567_p2 = pnand %p565_p1, %p562_p0 }
  0x81   :  { %570 = shalt.err (!%p567_p2)
}
  0x82   :  { %s571_s10 = scalar_lea.vmem %s103_s15, 16  ;;  %s575_s1 = scalar_lea.vmem %s103_s15, 32 }
  0x83   :  { %p572_p3 = scmp.ne.s32.totalorder %s103_s15, %s571_s10  ;;  %p576_p4 = scmp.lt.s32.totalorder %s103_s15, %s103_s15 }
  0x84   :  { %p577_p5 = scmp.lt.s32.totalorder %s575_s1, %s571_s10 }
  0x86   :  { %p578_p6 = por %p577_p5, %p576_p4 }
  0x88   :  { %p579_p7 = pnand %p578_p6, %p572_p3 }
  0x8a   :  { %582 = shalt.err (!%p579_p7)
}
  0x8b   :  { %105 = dma.hbm_to_vmem [thread:$0]  %s807_s7, 16, %s103_s15, [#allocation16]  }
  0x8c   :  { %605 = dma.done.wait [#allocation4], 64  }
  0x8d   :  { %606 = vsyncadd [#allocation4], 4294967232 }
  0x8e   :  { %607 = dma.done.wait [#allocation7], 192  }
  0x8f   :  { %608 = vsyncadd [#allocation7], 4294967104 }
  0x90   :  { %609 = dma.done.wait [#allocation10], 80  }
  0x91   :  { %610 = vsyncadd [#allocation10], 4294967216 }
  0x92   :  { %611 = dma.done.wait [#allocation13], 272  }
  0x93   :  { %612 = vsyncadd [#allocation13], 4294967024 }
  0x94   :  { %613 = dma.done.wait [#allocation16], 16  }
  0x95   :  { %614 = vsyncadd [#allocation16], 4294967280  ;;  %v627_v1 = vmov 0.0   ;;  %vm628_vm0 = vmmov 0   ;;  %vm142_vm1 = vcmask 1043456   ;;  %v404_v4 = vld [vmem:[#allocation8] sm:$0xff]  }
  0x96   :  { %371 = vmatprep.subr.bf16.mxu0 %v627_v1  ;;  %377 = vmatprep.subr.bf16.mxu1 %v627_v1  ;;  %v137_v2 = vld [vmem:[#allocation9] sm:$0xf]  ;;  %v136_v5 = vld [vmem:[#allocation6] sm:$0xf]  ;;  %vm138_vm2 = vcmask 64512   ;;  %vm192_vm3 = vcmask 130048  }
  0x97   :  { %373 = vmatprep.mubr.msk.bf16.mxu0 %vm628_vm0, %v627_v1  ;;  %379 = vmatprep.mubr.msk.bf16.mxu1 %vm628_vm0, %v627_v1  ;;  %v144_v3 = vsel %vm142_vm1, %v137_v2, 0  ;;  %v133_v6 = vld [vmem:[#allocation3] sm:$0xf]  ;;  %v405_v7 = vld [vmem:[#allocation12] sm:$0xff]   ;;  %v357_v12 = vld [vmem:[#allocation11] ss:$0 sm:$0xff] }
  0x98   :  { %372 = vmatpush3.bf16.msra.mxu0 %v144_v3  ;;  %378 = vmatpush3.bf16.msra.mxu1 %v404_v4  ;;  %v406_v8 = vld [vmem:[#allocation12 + $0x8] sm:$0xff]   ;;  %vm269_vm4 = vcmask 261120   ;;  %v358_v22 = vld [vmem:[#allocation14] ss:$0 sm:$0xff]  ;;  %v362_v27 = vld [vmem:[#allocation15] ss:$0 sm:$0xff] }
  0x99   :  { %383 = vmatprep.subr.bf16.mxu0 %v627_v1  ;;  %v363_v32 = vld [vmem:[#allocation2] ss:$0 sm:$0xff]  ;;  %s629_s7 = smov [#allocation17]   ;;  %vm333_vm5 = vcmask 7168  }
  0x9a   :  { %s341_s5 = sshll.u32 %s629_s7, 4  ;;  %s342_s5 = int_to_ptr.vmem [resolvable:$true] %s341_s5 }
  0x9b   :  { %374 = vmatmul.mubr.msk.bf16.vlgmr.msra.gmra.mrb[0].mxu0 %vm138_vm2, %v136_v5  ;;  %380 = vmatmul.mubr.msk.bf16.vlgmr.msra.gmra.mrb[0].mxu1 %vm192_vm3, %v133_v6  ;;  %s583_s2 = scalar_lea.vmem %s342_s5, 128  ;;  %p588_p9 = scmp.lt.s32.totalorder %s342_s5, %s342_s5 }
  0x9c   :  { %387 = vmatprep.mubr.msk.bf16.mxu0 %vm628_vm0, %v627_v1  ;;  %384 = vmatpush3.bf16.msra.mxu0 %v405_v7  ;;  %p584_p8 = scmp.ne.s32.totalorder %s342_s5, %s583_s2  ;;  %p589_p10 = scmp.lt.s32.totalorder %s583_s2, %s583_s2 }
  0x9d   :  { %385 = vmatprep.subr.bf16.mxu0 %v627_v1 }
  0x9e   :  { %p590_p11 = por %p589_p10, %p588_p9 }
  0xa0   :  { %386 = vmatpush3.bf16.msra.mxu0 %v406_v8  ;;  %p591_p12 = pnand %p590_p11, %p584_p8 }
 0x16e   :  { %v180_v9 = vpop.f32.mrb[0].mxu0  ;;  %v230_v11 = vpop.f32.mrb[0].mxu1 }
 0x16f   :  { %v375_v10 = vpop.f32.mrb[1].mxu0  ;;  %v231_v13 = vadd.f32 %v230_v11, %v180_v9  ;;  %v381_v15 = vpop.f32.mrb[1].mxu1 }
 0x170   :  { %v183_v14 = vpop.f32.mrb[2].mxu0  ;;  %v233_v17 = vpop.f32.mrb[2].mxu1 }
 0x171   :  { %v376_v16 = vpop.f32.mrb[3].mxu0  ;;  %v243_v18 = vadd.f32 %v357_v12, %v231_v13  ;;  %v382_v19 = vpop.f32.mrb[3].mxu1 }
 0x173   :  { %v244_v20 = vmax.f32 %v243_v18, 0.0 }
 0x175   :  { %v245_v21 = vpack.c.bf16 %v244_v20, %v244_v20 }
 0x177   :  { %388 = vmatmul.mubr.msk.bf16.vlgmr.msra.gmra.mrb[4].mxu0 %vm269_vm4, %v245_v21 }
 0x24a   :  { %v307_v23 = vpop.f32.mrb[4].mxu0 }
 0x24b   :  { %v308_v24 = vadd.f32 %v358_v22, %v307_v23  ;;  %v389_v25 = vpop.f32.mrb[5].mxu0 }
 0x24c   :  { %v310_v26 = vpop.f32.mrb[6].mxu0 }
 0x24d   :  { %v313_v28 = vmax.f32 %v308_v24, 0.0  ;;  %v390_v29 = vpop.f32.mrb[7].mxu0 }
 0x24f   :  { %v321_v30 = vmul.f32 %v362_v27, %v313_v28 }
 0x251   :  { %v322_v31 = vsel %vm269_vm4, %v321_v30, 0.0 }
 0x252   :  { %323 = vadd.xlane.f32.xlu0 %v322_v31 }
 0x2df   :  { %v324_v33 = vpop.xlane.xlu0 %323 }
 0x2e0   :  { %v332_v34 = vadd.f32 %v363_v32, %v324_v33 }
 0x2e2   :  { %334 = vst.msk [vmem:[#allocation17] sm:$0xff] %vm333_vm5, %v332_v34 }
 0x2e3   :  { %594 = shalt.err (!%p591_p12)
}
 0x2e4   :  { %s595_s12 = scalar_lea.hbm %s809_s9, 128 }
 0x2e5   :  { %p596_p13 = scmp.ne.s32.totalorder %s809_s9, %s595_s12  ;;  %p599_p0 = scmp.lt.u32.totalorder %s595_s12, %s809_s9 }
 0x2e7   :  { %p601_p1 = pnand %p599_p0, %p596_p13 }
 0x2e9   :  { %604 = shalt.err (!%p601_p1)
}
 0x2ea   :  { %344 = dma.vmem_to_hbm [thread:$0]  %s342_s5, 128, %s809_s9, [#allocation5]  }
 0x2eb   :  { %615 = dma.done.wait [#allocation5], 128  }
 0x2ec   :  { %616 = vsyncadd [#allocation5], 4294967168 }
 0x2ed   :  { %348 = vsyncpa [#allocation4], 1 }
 0x2ee   :  { %349 = vsyncpa [#allocation7], 1 }
 0x2ef   :  { %350 = vsyncpa [#allocation10], 1 }
 0x2f0   :  { %351 = vsyncpa [#allocation13], 1 }
 0x2f1   :  { %352 = vsyncpa [#allocation16], 1 }
 0x2f2   :  { %353 = vsyncpa [#allocation5], 1 }

</bundles_post_ra>
